<compile_context>
chip_gen: v6e
topology: v6e:2x2x1
jax: 0.10.0
libtpu: 0.0.40
codegen_flags: <defaults>
</compile_context>

<pallas_src>
import math
from functools import partial, lru_cache

import numpy as np
import jax
import jax.numpy as jnp
from jax import lax
from jax.experimental import pallas as pl
from jax.experimental.pallas import tpu as pltpu

# ----------------------------- model config -----------------------------------------
MAX_OCR_LEN = 8                               # synthetic; module needs 2*MAX_OCR_LEN
MAX_PREDICTED_TOKENS = 2 * MAX_OCR_LEN        # 16
EMBED_DIM = 96
DEPTHS = (2, 2, 18, 2)
NUM_HEADS = (3, 6, 12, 24)
WINDOW = 8
MLP_RATIO = 4
PATCH = 4
LN_EPS = 1e-5

FINAL_DIM = EMBED_DIM * 2 ** (len(DEPTHS) - 1)                 # 768
N_PATCHES = 2 ** math.ceil(math.log2(MAX_PREDICTED_TOKENS))    # 16
assert FINAL_DIM % N_PATCHES == 0
PATCH_SIZE = FINAL_DIM // N_PATCHES                            # 48
LSTM_HIDDEN = 384

# per-kernel scoped-VMEM limits (v7x has only 64 MiB physical VMEM -> keep headroom)
VMEM_SMALL = 32 * 1024 * 1024
VMEM_BIG = 48 * 1024 * 1024


def _round_up(x, m):
    return (x + m - 1) // m * m


def _row_tile(M):
    if M >= 256:
        return 256
    if M >= 128:
        return 128
    return _round_up(M, 8)


def _gelu_tanh(y):
    # TODO(synk): nn.GELU default is exact erf-GELU; tanh approximation used here
    # because Mosaic has no erf lowering.
    return 0.5 * y * (1.0 + jnp.tanh(0.7978845608028654 * (y + 0.044715 * y * y * y)))


def _cparams(vmem, sem=None):
    return pltpu.CompilerParams(dimension_semantics=sem, vmem_limit_bytes=vmem)


# ----------------------------- Pallas kernels ----------------------------------------
def _linear_kernel(x_ref, w_ref, b_ref, o_ref, *, act):
    # x,w are bf16; accumulate in f32
    y = jnp.dot(x_ref[...], w_ref[...], preferred_element_type=jnp.float32)
    y = y + b_ref[...]
    if act == "relu":
        y = jnp.maximum(y, 0.0)
    elif act == "gelu":
        y = _gelu_tanh(y)
    o_ref[...] = y


@partial(jax.jit, static_argnames=("act",))
def pallas_linear(x, w, b=None, act="none"):
    """act((M,K) @ (K,N) + b); bf16 MXU inputs, f32 accumulation, tiled over rows."""
    M, K = x.shape
    N = w.shape[1]
    if b is None:
        b = jnp.zeros((N,), jnp.float32)
    xb = x.astype(jnp.bfloat16)
    wb = w.astype(jnp.bfloat16)      # no-op: weights are stored bf16 in the pytree
    tm = _row_tile(M)
    Mp = _round_up(M, tm)
    xb = jnp.pad(xb, ((0, Mp - M), (0, 0)))
    out = pl.pallas_call(
        partial(_linear_kernel, act=act),
        grid=(Mp // tm,),
        in_specs=[
            pl.BlockSpec((tm, K), lambda i: (i, 0)),
            pl.BlockSpec((K, N), lambda i: (0, 0)),
            pl.BlockSpec((1, N), lambda i: (0, 0)),
        ],
        out_specs=pl.BlockSpec((tm, N), lambda i: (i, 0)),
        out_shape=jax.ShapeDtypeStruct((Mp, N), jnp.float32),
        compiler_params=_cparams(VMEM_SMALL, ("parallel",)),
    )(xb, wb, b.reshape(1, N).astype(jnp.float32))
    return out[:M]


def _layernorm_kernel(x_ref, g_ref, b_ref, o_ref, *, eps):
    x = x_ref[...]
    mu = jnp.mean(x, axis=-1, keepdims=True)
    var = jnp.mean(jnp.square(x - mu), axis=-1, keepdims=True)
    o_ref[...] = (x - mu) * lax.rsqrt(var + eps) * g_ref[...] + b_ref[...]


@jax.jit
def pallas_layernorm(x, gamma, beta):
    M, C = x.shape
    tm = _row_tile(M)
    Mp = _round_up(M, tm)
    xp = jnp.pad(x.astype(jnp.float32), ((0, Mp - M), (0, 0)))
    out = pl.pallas_call(
        partial(_layernorm_kernel, eps=LN_EPS),
        grid=(Mp // tm,),
        in_specs=[
            pl.BlockSpec((tm, C), lambda i: (i, 0)),
            pl.BlockSpec((1, C), lambda i: (0, 0)),
            pl.BlockSpec((1, C), lambda i: (0, 0)),
        ],
        out_specs=pl.BlockSpec((tm, C), lambda i: (i, 0)),
        out_shape=jax.ShapeDtypeStruct((Mp, C), jnp.float32),
        compiler_params=_cparams(VMEM_SMALL, ("parallel",)),
    )(xp, gamma.reshape(1, C).astype(jnp.float32), beta.reshape(1, C).astype(jnp.float32))
    return out[:M]


def _residual_ln_kernel(x_ref, a_ref, g_ref, b_ref, o_ref, *, eps):
    # o = x + LayerNorm(a)   (residual fused into the LN kernel); `a` may be bf16
    a = a_ref[...].astype(jnp.float32)
    mu = jnp.mean(a, axis=-1, keepdims=True)
    var = jnp.mean(jnp.square(a - mu), axis=-1, keepdims=True)
    o_ref[...] = x_ref[...] + (a - mu) * lax.rsqrt(var + eps) * g_ref[...] + b_ref[...]


@jax.jit
def pallas_residual_layernorm(x, a, gamma, beta):
    M, C = x.shape
    tm = _row_tile(M)
    Mp = _round_up(M, tm)
    xp = jnp.pad(x.astype(jnp.float32), ((0, Mp - M), (0, 0)))
    ap = jnp.pad(a, ((0, Mp - M), (0, 0)))        # keep bf16, cast in-kernel
    out = pl.pallas_call(
        partial(_residual_ln_kernel, eps=LN_EPS),
        grid=(Mp // tm,),
        in_specs=[
            pl.BlockSpec((tm, C), lambda i: (i, 0)),
            pl.BlockSpec((tm, C), lambda i: (i, 0)),
            pl.BlockSpec((1, C), lambda i: (0, 0)),
            pl.BlockSpec((1, C), lambda i: (0, 0)),
        ],
        out_specs=pl.BlockSpec((tm, C), lambda i: (i, 0)),
        out_shape=jax.ShapeDtypeStruct((Mp, C), jnp.float32),
        compiler_params=_cparams(VMEM_SMALL, ("parallel",)),
    )(xp, ap, gamma.reshape(1, C).astype(jnp.float32),
      beta.reshape(1, C).astype(jnp.float32))
    return out[:M]


def _mlp_ln_res_kernel(x_ref, w1_ref, b1_ref, w2_ref, b2_ref, g_ref, bb_ref, o_ref, *, eps):
    # o = x + LayerNorm(GELU(x @ w1 + b1) @ w2 + b2)   (whole Swin MLP branch fused)
    x = x_ref[...]
    h = jnp.dot(x.astype(jnp.bfloat16), w1_ref[...],
                preferred_element_type=jnp.float32) + b1_ref[...]
    h = _gelu_tanh(h)
    y = jnp.dot(h.astype(jnp.bfloat16), w2_ref[...],
                preferred_element_type=jnp.float32) + b2_ref[...]
    mu = jnp.mean(y, axis=-1, keepdims=True)
    var = jnp.mean(jnp.square(y - mu), axis=-1, keepdims=True)
    o_ref[...] = x + (y - mu) * lax.rsqrt(var + eps) * g_ref[...] + bb_ref[...]


@jax.jit
def pallas_mlp_block(x, w1, b1, w2, b2, gamma, beta):
    M, C = x.shape
    Ch = w1.shape[1]
    tm = _row_tile(M)
    Mp = _round_up(M, tm)
    xp = jnp.pad(x.astype(jnp.float32), ((0, Mp - M), (0, 0)))
    out = pl.pallas_call(
        partial(_mlp_ln_res_kernel, eps=LN_EPS),
        grid=(Mp // tm,),
        in_specs=[
            pl.BlockSpec((tm, C), lambda i: (i, 0)),
            pl.BlockSpec((C, Ch), lambda i: (0, 0)),
            pl.BlockSpec((1, Ch), lambda i: (0, 0)),
            pl.BlockSpec((Ch, C), lambda i: (0, 0)),
            pl.BlockSpec((1, C), lambda i: (0, 0)),
            pl.BlockSpec((1, C), lambda i: (0, 0)),
            pl.BlockSpec((1, C), lambda i: (0, 0)),
        ],
        out_specs=pl.BlockSpec((tm, C), lambda i: (i, 0)),
        out_shape=jax.ShapeDtypeStruct((Mp, C), jnp.float32),
        compiler_params=_cparams(VMEM_BIG, ("parallel",)),
    )(xp, w1, b1.reshape(1, Ch).astype(jnp.float32),
      w2, b2.reshape(1, C).astype(jnp.float32),
      gamma.reshape(1, C).astype(jnp.float32), beta.reshape(1, C).astype(jnp.float32))
    return out[:M]


def _fused_attn_kernel(x_ref, qkvw_ref, qkvb_ref, rpb_ref, scale_ref, projw_ref,
                       projb_ref, *rest, num_heads, wt, n, has_mask):
    # WT windows per grid step: big-M QKV proj -> per-window/per-head cosine attention
    # (VMEM-scratch intermediates) -> one big-M output projection. Output is bf16.
    if has_mask:
        mask_ref, o_ref, qkv_scr, attn_scr = rest
    else:
        o_ref, qkv_scr, attn_scr = rest
        mask_ref = None
    C = x_ref.shape[1]
    Dh = C // num_heads

    # (WT*N, C) @ (C, 3C) on the MXU, result kept in VMEM scratch (not vregs).
    qkv_scr[...] = jnp.dot(x_ref[...], qkvw_ref[...],
                           preferred_element_type=jnp.float32) + qkvb_ref[...]

    for h in range(num_heads):
        q = qkv_scr[:, h * Dh:(h + 1) * Dh]
        k = qkv_scr[:, C + h * Dh:C + (h + 1) * Dh]
        v = qkv_scr[:, 2 * C + h * Dh:2 * C + (h + 1) * Dh]
        # cosine attention: rsqrt goes to the EUP slot; clamp matches F.normalize(eps=1e-12)
        qn = (q * lax.rsqrt(jnp.maximum(jnp.sum(q * q, axis=-1, keepdims=True), 1e-24))
              ).astype(jnp.bfloat16)
        kn = (k * lax.rsqrt(jnp.maximum(jnp.sum(k * k, axis=-1, keepdims=True), 1e-24))
              ).astype(jnp.bfloat16)
        vb = v.astype(jnp.bfloat16)
        rpb_h = rpb_ref[h]                      # (N, N) f32
        sc = scale_ref[h]                       # scalar from SMEM
        for w in range(wt):
            r0, r1 = w * n, (w + 1) * n
            s = jnp.dot(qn[r0:r1], kn[r0:r1].T, preferred_element_type=jnp.float32)
            s = s * sc + rpb_h
            if has_mask:
                s = s + mask_ref[r0:r1, :]
            s = s - jnp.max(s, axis=-1, keepdims=True)
            p = jnp.exp(s)
            p = p * pl.reciprocal(jnp.sum(p, axis=-1, keepdims=True), approx=True)
            attn_scr[r0:r1, h * Dh:(h + 1) * Dh] = jnp.dot(
                p.astype(jnp.bfloat16), vb[r0:r1],
                preferred_element_type=jnp.float32).astype(jnp.bfloat16)

    o_ref[...] = (jnp.dot(attn_scr[...], projw_ref[...],
                          preferred_element_type=jnp.float32)
                  + projb_ref[...]).astype(jnp.bfloat16)


def _meanpool_kernel(x_ref, o_ref):
    o_ref[...] = jnp.mean(x_ref[...], axis=1)


@jax.jit
def pallas_meanpool(x):
    # x: (B, S, C) -> (B, C)  == permute->AdaptiveAvgPool2d(1)->flatten
    B, S, C = x.shape
    return pl.pallas_call(
        _meanpool_kernel,
        out_shape=jax.ShapeDtypeStruct((B, C), jnp.float32),
        compiler_params=_cparams(VMEM_SMALL),
    )(x.astype(jnp.float32))


def _bilstm_dir_kernel(xw_ref, whh_ref, h_ref, *, hidden, steps):
    # One direction of one nn.LSTM layer, all timesteps, w_hh resident in VMEM.
    # Grid axis (size 2) runs fwd/bwd -> parallel across the two TCs on v7x.
    Bp = xw_ref.shape[2]
    whh = whh_ref[0]                                        # (H, 4H) bf16
    h = jnp.zeros((Bp, hidden), jnp.float32)
    c = jnp.zeros((Bp, hidden), jnp.float32)
    for t in range(steps):                                  # static unroll, no dispatch/step
        g = xw_ref[0, t] + jnp.dot(h.astype(jnp.bfloat16), whh,
                                   preferred_element_type=jnp.float32)
        ifg = jax.nn.sigmoid(g[:, :2 * hidden])             # i and f gates, one EUP pass
        i_g = ifg[:, :hidden]
        f_g = ifg[:, hidden:]
        g_g = jnp.tanh(g[:, 2 * hidden:3 * hidden])
        o_g = jax.nn.sigmoid(g[:, 3 * hidden:])
        c = f_g * c + i_g * g_g
        h = o_g * jnp.tanh(c)
        h_ref[0, t] = h


def pallas_bilstm_layer(xw_fb, w_hh_fb):
    # xw_fb: (2, T, Bp, 4H) f32 (dir 0 = forward, dir 1 = backward/time-reversed)
    # w_hh_fb: (2, H, 4H) bf16
    _, T, Bp, H4 = xw_fb.shape
    Hd = H4 // 4
    return pl.pallas_call(
        partial(_bilstm_dir_kernel, hidden=Hd, steps=T),
        grid=(2,),
        in_specs=[
            pl.BlockSpec((1, T, Bp, H4), lambda d: (d, 0, 0, 0)),
            pl.BlockSpec((1, Hd, H4), lambda d: (d, 0, 0)),
        ],
        out_specs=pl.BlockSpec((1, T, Bp, Hd), lambda d: (d, 0, 0, 0)),
        out_shape=jax.ShapeDtypeStruct((2, T, Bp, Hd), jnp.float32),
        compiler_params=_cparams(VMEM_SMALL, ("parallel",)),
    )(xw_fb.astype(jnp.float32), w_hh_fb.astype(jnp.bfloat16))


# ----------------------------- small glue helpers -------------------------------------
def linear_nd(x, w, b=None, act="none"):
    shp = x.shape
    y = pallas_linear(x.reshape(-1, shp[-1]), w, b, act=act)
    return y.reshape(shp[:-1] + (w.shape[1],))


def layernorm_nd(x, gamma, beta):
    shp = x.shape
    return pallas_layernorm(x.reshape(-1, shp[-1]), gamma, beta).reshape(shp)


# static relative-position tables (window is always (8, 8) in swin_v2_s)
def _make_rel_tables(win):
    rh = np.arange(-(win - 1), win, dtype=np.float32)
    rw = np.arange(-(win - 1), win, dtype=np.float32)
    table = np.stack(np.meshgrid(rh, rw, indexing="ij")).transpose(1, 2, 0)
    table[..., 0] /= (win - 1)
    table[..., 1] /= (win - 1)
    table *= 8.0
    table = np.sign(table) * np.log2(np.abs(table) + 1.0) / 3.0
    table = table.reshape(-1, 2)

    ch = np.arange(win)
    coords = np.stack(np.meshgrid(ch, ch, indexing="ij")).reshape(2, -1)
    rel = (coords[:, :, None] - coords[:, None, :]).transpose(1, 2, 0).astype(np.int64)
    rel[..., 0] += win - 1
    rel[..., 1] += win - 1
    rel[..., 0] *= 2 * win - 1
    idx = rel.sum(-1).reshape(-1)
    return jnp.asarray(table, jnp.float32), jnp.asarray(idx, jnp.int32)


REL_TABLE, REL_INDEX = _make_rel_tables(WINDOW)


@lru_cache(maxsize=None)
def _shift_attn_mask(pad_h, pad_w, sh, sw):
    ws = WINDOW
    m = np.zeros((pad_h, pad_w), np.float32)
    cnt = 0
    for hs in ((0, pad_h - ws), (pad_h - ws, pad_h - sh), (pad_h - sh, pad_h)):
        for wsl in ((0, pad_w - ws), (pad_w - ws, pad_w - sw), (pad_w - sw, pad_w)):
            m[hs[0]:hs[1], wsl[0]:wsl[1]] = cnt
            cnt += 1
    m = m.reshape(pad_h // ws, ws, pad_w // ws, ws).transpose(0, 2, 1, 3).reshape(-1, ws * ws)
    diff = m[:, None, :] - m[:, :, None]
    return jnp.asarray(np.where(diff != 0, -100.0, 0.0).astype(np.float32))


# ----------------------------- Swin V2 backbone ---------------------------------------
@jax.jit
def patch_embed(x, p):
    B, C, H, W = x.shape
    gh, gw = H // PATCH, W // PATCH
    xp = x.reshape(B, C, gh, PATCH, gw, PATCH).transpose(0, 2, 4, 1, 3, 5)
    xp = xp.reshape(B * gh * gw, C * PATCH * PATCH)
    y = pallas_linear(xp, p["w"], p["b"]).reshape(B, gh, gw, EMBED_DIM)
    return layernorm_nd(y, p["ln_g"], p["ln_b"])


def shifted_window_attention(x, p, num_heads, shift):
    B, H, W, C = x.shape
    ws = WINDOW
    pad_b = (ws - H % ws) % ws
    pad_r = (ws - W % ws) % ws
    xpad = jnp.pad(x, ((0, 0), (0, pad_b), (0, pad_r), (0, 0)))
    pH, pW = H + pad_b, W + pad_r
    sh = 0 if ws >= pH else shift
    sw = 0 if ws >= pW else shift
    has_mask = (sh > 0 or sw > 0)
    if has_mask:
        xpad = jnp.roll(xpad, shift=(-sh, -sw), axis=(1, 2))

    nH, nW = pH // ws, pW // ws
    nwin = nH * nW
    N = ws * ws
    Wb = B * nwin
    xw = xpad.reshape(B, nH, ws, nW, ws, C).transpose(0, 1, 3, 2, 4, 5).reshape(Wb * N, C)

    # continuous relative position bias (CPB MLP): K=2, 225 rows -> keep in plain XLA.
    t = jnp.maximum(REL_TABLE @ p["cpb_w1"] + p["cpb_b1"], 0.0)
    t = t @ p["cpb_w2"]
    rpb = 16.0 * jax.nn.sigmoid(
        t[REL_INDEX].reshape(N, N, num_heads).transpose(2, 0, 1))          # (H, N, N)

    scale = jnp.exp(jnp.minimum(p["logit_scale"], math.log(100.0)))        # (H,)

    # window batch size: fill MXU rows (>=256 on v6e/v7x) while keeping grid>=1 step
    wt = 1
    for cand in (4, 2):
        if Wb % cand == 0:
            wt = cand
            break
    M = wt * N

    in_specs = [
        pl.BlockSpec((M, C), lambda i: (i, 0)),                    # WT windows (bf16)
        pl.BlockSpec((C, 3 * C), lambda i: (0, 0)),                # qkv_w (resident)
        pl.BlockSpec((1, 3 * C), lambda i: (0, 0)),                # qkv_b
        pl.BlockSpec((num_heads, N, N), lambda i: (0, 0, 0)),      # rel-pos bias (resident)
        pl.BlockSpec(memory_space=pltpu.MemorySpace.SMEM),         # per-head logit scale
        pl.BlockSpec((C, C), lambda i: (0, 0)),                    # proj_w (resident)
        pl.BlockSpec((1, C), lambda i: (0, 0)),                    # proj_b
    ]
    args = [xw.astype(jnp.bfloat16), p["qkv_w"],
            p["qkv_b"].reshape(1, 3 * C).astype(jnp.float32),
            rpb.astype(jnp.float32), scale.astype(jnp.float32),
            p["proj_w"], p["proj_b"].reshape(1, C).astype(jnp.float32)]
    if has_mask:
        mask = _shift_attn_mask(pH, pW, sh, sw)                    # (nwin, N, N)
        mask_flat = jnp.tile(mask, (B, 1, 1)).reshape(Wb * N, N)
        in_specs.append(pl.BlockSpec((M, N), lambda i: (i, 0)))
        args.append(mask_flat)

    out = pl.pallas_call(
        partial(_fused_attn_kernel, num_heads=num_heads, wt=wt, n=N, has_mask=has_mask),
        grid=(Wb // wt,),
        in_specs=in_specs,
        out_specs=pl.BlockSpec((M, C), lambda i: (i, 0)),
        out_shape=jax.ShapeDtypeStruct((Wb * N, C), jnp.bfloat16),
        scratch_shapes=[pltpu.VMEM((M, 3 * C), jnp.float32),       # QKV intermediate
                        pltpu.VMEM((M, C), jnp.bfloat16)],         # per-head outputs
        compiler_params=_cparams(VMEM_BIG, ("parallel",)),
    )(*args)

    a = out.reshape(B, nH, nW, ws, ws, C).transpose(0, 1, 3, 2, 4, 5).reshape(B, pH, pW, C)
    if has_mask:
        a = jnp.roll(a, shift=(sh, sw), axis=(1, 2))
    return a[:, :H, :W, :]


@partial(jax.jit, static_argnames=("num_heads", "shift"))
def swin_block(x, p, num_heads, shift):
    # SwinTransformerBlockV2: x = x + norm1(attn(x)); x = x + norm2(mlp(x))
    # TODO(synk): stochastic depth is train-mode only; identity here (eval semantics).
    B, H, W, C = x.shape
    a = shifted_window_attention(x, p["attn"], num_heads, shift)          # bf16
    x = pallas_residual_layernorm(x.reshape(-1, C), a.reshape(-1, C),
                                  p["norm1_g"], p["norm1_b"]).reshape(B, H, W, C)
    x = pallas_mlp_block(x.reshape(-1, C), p["mlp_w1"], p["mlp_b1"],
                         p["mlp_w2"], p["mlp_b2"],
                         p["norm2_g"], p["norm2_b"]).reshape(B, H, W, C)
    return x


@jax.jit
def patch_merging(x, p):
    x0 = x[:, 0::2, 0::2, :]
    x1 = x[:, 1::2, 0::2, :]
    x2 = x[:, 0::2, 1::2, :]
    x3 = x[:, 1::2, 1::2, :]
    xc = jnp.concatenate([x0, x1, x2, x3], axis=-1)
    y = linear_nd(xc, p["red_w"], None)            # Linear(4C, 2C, bias=False)
    return layernorm_nd(y, p["ln_g"], p["ln_b"])


def swin_backbone(x, params):
    y = patch_embed(x, params["patch_embed"])
    for si, depth in enumerate(DEPTHS):
        for bi in range(depth):
            shift = 0 if bi % 2 == 0 else WINDOW // 2
            y = swin_block(y, params["stages"][si][bi],
                           num_heads=NUM_HEADS[si], shift=shift)
        if si < len(DEPTHS) - 1:
            y = patch_merging(y, params["merge"][si])
    y = layernorm_nd(y, params["norm_g"], params["norm_b"])
    B, h, w, C = y.shape
    return pallas_meanpool(y.reshape(B, h * w, C))          # (B, 768)


# ----------------------------- RNN OCR head -------------------------------------------
def conv1d_relu(x, w, b):
    # x: (B, Cin, L), w: (Cout, Cin, k), 'same' padding, stride 1, fused ReLU.
    B, Cin, L = x.shape
    Cout, _, k = w.shape
    pad = (k - 1) // 2
    xp = jnp.pad(x, ((0, 0), (0, 0), (pad, pad)))
    cols = jnp.stack([xp[:, :, i:i + L] for i in range(k)], axis=-1)      # (B, Cin, L, k)
    cols = cols.transpose(0, 2, 1, 3).reshape(B * L, Cin * k)
    y = pallas_linear(cols, w.reshape(Cout, Cin * k).T, b, act="relu")
    return y.reshape(B, L, Cout).transpose(0, 2, 1)


def bilstm(x, lstm_params):
    out = x
    for layer in lstm_params:
        fw, bw = layer["fwd"], layer["bwd"]
        B, T, In = out.shape
        Hd = LSTM_HIDDEN
        # one matmul for both directions' input projections
        w_cat = jnp.concatenate([fw["w_ih"], bw["w_ih"]], axis=1)          # (In, 8H) bf16
        b_cat = jnp.concatenate([fw["b_ih"] + fw["b_hh"], bw["b_ih"] + bw["b_hh"]])
        xw = pallas_linear(out.reshape(B * T, In), w_cat, b_cat).reshape(B, T, 8 * Hd)
        Bp = _round_up(B, 8)
        xw = jnp.pad(xw, ((0, Bp - B), (0, 0), (0, 0)))
        xw_f = xw[:, :, :4 * Hd].transpose(1, 0, 2)                        # (T, Bp, 4H)
        xw_b = xw[:, :, 4 * Hd:].transpose(1, 0, 2)[::-1]                  # time-reversed
        xw_fb = jnp.stack([xw_f, xw_b], axis=0)                            # (2, T, Bp, 4H)
        w_hh_fb = jnp.stack([fw["w_hh"], bw["w_hh"]], axis=0)              # (2, H, 4H)
        hs = pallas_bilstm_layer(xw_fb, w_hh_fb)                           # (2, T, Bp, H)
        hf = hs[0].transpose(1, 0, 2)[:B]
        hb = hs[1][::-1].transpose(1, 0, 2)[:B]
        out = jnp.concatenate([hf, hb], axis=-1)
        # TODO(synk): nn.LSTM inter-layer dropout (p=0.1) is train-mode only; eval here.
    return out


@jax.jit
def rnn_ocr_head(x, p):
    B = x.shape[0]
    y = x[:, None, :]                                  # unsqueeze(1): (B, 1, 768)
    for w, b in p["convs"]:
        y = conv1d_relu(y, w, b)                       # -> (B, N_PATCHES, 768)
    y = y.reshape(B, N_PATCHES, N_PATCHES, PATCH_SIZE)
    y = y.transpose(0, 2, 1, 3).reshape(B, N_PATCHES, N_PATCHES * PATCH_SIZE)
    enc = bilstm(y, p["lstm"])                         # (B, N_PATCHES, 768)
    h = pallas_linear(enc.reshape(B * N_PATCHES, 2 * LSTM_HIDDEN),
                      p["fc1_w"], p["fc1_b"], act="relu")
    out = pallas_linear(h, p["fc2_w"], p["fc2_b"])
    return out.reshape(B, N_PATCHES, -1)


def swin_v2_small_patched(x, params):
    feats = swin_backbone(x, params["backbone"])       # (B, 768)
    return rnn_ocr_head(feats, params["head"])         # (B, N_PATCHES, n_classes)


# ----------------------------- deterministic parameter init ---------------------------
def _dense(key, shape, scale=0.02, dtype=jnp.float32):
    # matmul weights are stored bf16 in the pytree (no per-forward re-cast traffic)
    return (scale * jax.random.normal(key, shape, jnp.float32)).astype(dtype)


def init_params(key, n_classes):
    kit = iter(jax.random.split(key, 1024))
    nk = lambda: next(kit)
    bf = jnp.bfloat16

    backbone = {
        "patch_embed": dict(
            w=_dense(nk(), (3 * PATCH * PATCH, EMBED_DIM), dtype=bf),
            b=jnp.zeros((EMBED_DIM,), jnp.float32),
            ln_g=jnp.ones((EMBED_DIM,), jnp.float32),
            ln_b=jnp.zeros((EMBED_DIM,), jnp.float32),
        )
    }
    stages = []
    for si, depth in enumerate(DEPTHS):
        C = EMBED_DIM * (2 ** si)
        Hn = NUM_HEADS[si]
        blocks = []
        for _ in range(depth):
            # k-bias third of qkv_b is zeroed in ShiftedWindowAttentionV2's forward;
            # it is initialized to zero here, so no per-call zeroing is needed.
            blocks.append(dict(
                attn=dict(
                    qkv_w=_dense(nk(), (C, 3 * C), dtype=bf),
                    qkv_b=jnp.zeros((3 * C,), jnp.float32),
                    proj_w=_dense(nk(), (C, C), dtype=bf),
                    proj_b=jnp.zeros((C,), jnp.float32),
                    logit_scale=jnp.full((Hn,), math.log(10.0), jnp.float32),
                    cpb_w1=_dense(nk(), (2, 512)),
                    cpb_b1=jnp.zeros((512,), jnp.float32),
                    cpb_w2=_dense(nk(), (512, Hn)),
                ),
                norm1_g=jnp.ones((C,), jnp.float32), norm1_b=jnp.zeros((C,), jnp.float32),
                mlp_w1=_dense(nk(), (C, MLP_RATIO * C), dtype=bf),
                mlp_b1=jnp.zeros((MLP_RATIO * C,), jnp.float32),
                mlp_w2=_dense(nk(), (MLP_RATIO * C, C), dtype=bf),
                mlp_b2=jnp.zeros((C,), jnp.float32),
                norm2_g=jnp.ones((C,), jnp.float32), norm2_b=jnp.zeros((C,), jnp.float32),
            ))
        stages.append(blocks)
    backbone["stages"] = stages
    backbone["merge"] = []
    for si in range(len(DEPTHS) - 1):
        C = EMBED_DIM * (2 ** si)
        backbone["merge"].append(dict(
            red_w=_dense(nk(), (4 * C, 2 * C), dtype=bf),
            ln_g=jnp.ones((2 * C,), jnp.float32),
            ln_b=jnp.zeros((2 * C,), jnp.float32),
        ))
    backbone["norm_g"] = jnp.ones((FINAL_DIM,), jnp.float32)
    backbone["norm_b"] = jnp.zeros((FINAL_DIM,), jnp.float32)

    head = {}
    convs = []

    def conv_block(n_layers, cin, cout, k):
        convs.append((_dense(nk(), (cout, cin, k), dtype=bf),
                      jnp.zeros((cout,), jnp.float32)))
        for _ in range(n_layers):
            convs.append((_dense(nk(), (cout, cout, k), dtype=bf),
                          jnp.zeros((cout,), jnp.float32)))

    conv_block(3, 1, 8, 7)
    conv_block(3, 8, 32, 5)
    conv_block(3, 32, 64, 5)
    conv_block(3, 64, N_PATCHES, 3)
    head["convs"] = convs

    lstm = []
    in_sz = FINAL_DIM
    for _ in range(2):
        layer_p = {}
        for d in ("fwd", "bwd"):
            layer_p[d] = dict(
                w_ih=_dense(nk(), (in_sz, 4 * LSTM_HIDDEN), dtype=bf),
                w_hh=_dense(nk(), (LSTM_HIDDEN, 4 * LSTM_HIDDEN), dtype=bf),
                b_ih=jnp.zeros((4 * LSTM_HIDDEN,), jnp.float32),
                b_hh=jnp.zeros((4 * LSTM_HIDDEN,), jnp.float32),
            )
        lstm.append(layer_p)
        in_sz = 2 * LSTM_HIDDEN
    head["lstm"] = lstm
    head["fc1_w"] = _dense(nk(), (2 * LSTM_HIDDEN, LSTM_HIDDEN), dtype=bf)
    head["fc1_b"] = jnp.zeros((LSTM_HIDDEN,), jnp.float32)
    head["fc2_w"] = _dense(nk(), (LSTM_HIDDEN, n_classes), dtype=bf)
    head["fc2_b"] = jnp.zeros((n_classes,), jnp.float32)

    return dict(backbone=backbone, head=head)


# ----------------------------------- main ---------------------------------------------
if __name__ == "__main__":
    n_classes = 16
    key = jax.random.PRNGKey(0)
    pkey, xkey = jax.random.split(key)
    params = init_params(pkey, n_classes)

    # small NCHW image (PyTorch convention); any multiple of the 4x4 patch works.
    x = jax.random.normal(xkey, (2, 3, 64, 64), jnp.float32)

    out = swin_v2_small_patched(x, params)
    out = jax.block_until_ready(out)
    assert out.shape == (2, N_PATCHES, n_classes), out.shape
    assert jnp.all(jnp.isfinite(out))
    print("KERNEL_OK")
</pallas_src>

<mosaic_0001>
module attributes {stable_mosaic.version = 11 : i64} {
  func.func @_linear_kernel(%arg0: i32, %arg1: memref<256x48xbf16, #tpu.memory_space<vmem>>, %arg2: memref<48x96xbf16, #tpu.memory_space<vmem>>, %arg3: memref<1x96xf32, #tpu.memory_space<vmem>>, %arg4: memref<256x96xf32, #tpu.memory_space<vmem>>) attributes {dimension_semantics = [#tpu.dimension_semantics<parallel>], iteration_bounds = array<i64: 2>, scalar_prefetch = 0 : i64, scratch_operands = 0 : i64, tpu.core_type = #tpu.core_type<tc>, window_params = [{transform_indices = @transform_0, window_bounds = array<i64: 256, 48>}, {pipeline_mode = #tpu.pipeline_mode<synchronous>, transform_indices = @transform_1, window_bounds = array<i64: 48, 96>}, {pipeline_mode = #tpu.pipeline_mode<synchronous>, transform_indices = @transform_2, window_bounds = array<i64: 1, 96>}, {transform_indices = @transform_3, window_bounds = array<i64: 256, 96>}]} {
    %c0 = arith.constant 0 : index
    %c0_0 = arith.constant 0 : index
    %0 = vector.load %arg1[%c0, %c0_0] : memref<256x48xbf16, #tpu.memory_space<vmem>>, vector<256x48xbf16>
    %c0_1 = arith.constant 0 : index
    %c0_2 = arith.constant 0 : index
    %1 = vector.load %arg2[%c0_1, %c0_2] : memref<48x96xbf16, #tpu.memory_space<vmem>>, vector<48x96xbf16>
    %cst = arith.constant dense<0.000000e+00> : vector<256x96xf32>
    %2 = tpu.matmul %0, %1, %cst {dimension_numbers = #tpu.dot_dimension_numbers<[1], [0], [0], [1], [0, 0, 1, 1], [], []>} : vector<256x48xbf16>, vector<48x96xbf16>, vector<256x96xf32> -> vector<256x96xf32>
    %c0_3 = arith.constant 0 : index
    %c0_4 = arith.constant 0 : index
    %3 = vector.load %arg3[%c0_3, %c0_4] : memref<1x96xf32, #tpu.memory_space<vmem>>, vector<1x96xf32>
    %4 = vector.broadcast %3 : vector<1x96xf32> to vector<256x96xf32>
    %5 = arith.addf %2, %4 : vector<256x96xf32>
    %c0_5 = arith.constant 0 : index
    %c0_6 = arith.constant 0 : index
    %6 = vector.load %arg4[%c0_5, %c0_6] : memref<256x96xf32, #tpu.memory_space<vmem>>, vector<256x96xf32>
    tpu.vector_store %arg4[%c0_5, %c0_6], %5 {strides = array<i32>} : memref<256x96xf32, #tpu.memory_space<vmem>>, vector<256x96xf32>,
    return
  }
  func.func @transform_0(%arg0: i32) -> (i32, i32) {
    %c0_i32 = arith.constant 0 : i32
    %c0_i32_0 = arith.constant 0 : i32
    return %arg0, %c0_i32 : i32, i32
  }
  func.func @transform_1(%arg0: i32) -> (i32, i32) {
    %c0_i32 = arith.constant 0 : i32
    %c0_i32_0 = arith.constant 0 : i32
    %c0_i32_1 = arith.constant 0 : i32
    return %c0_i32, %c0_i32_0 : i32, i32
  }
  func.func @transform_2(%arg0: i32) -> (i32, i32) {
    %c0_i32 = arith.constant 0 : i32
    %c0_i32_0 = arith.constant 0 : i32
    %c0_i32_1 = arith.constant 0 : i32
    return %c0_i32, %c0_i32_0 : i32, i32
  }
  func.func @transform_3(%arg0: i32) -> (i32, i32) {
    %c0_i32 = arith.constant 0 : i32
    %c0_i32_0 = arith.constant 0 : i32
    return %arg0, %c0_i32 : i32, i32
  }
}

</mosaic_0001>

<bundles_post_ra>
// kernel: pallas_linear.1
= control target key start
LH: loop header
LB: loop body
LE: loop exit
PB: predicated region body
PF: predicated region fallthrough
CT: control target
= control target key end

     0   :  { %s782_s12 = smov 0   ;;  %s949_s0 = inlined_call_operand.vmem [shape: bf16[512,48], index: 0, kind: input, shape index: {}]   ;;  %s950_s1 = inlined_call_operand.vmem [shape: bf16[48,96], index: 1, kind: input, shape index: {}]   ;;  %s951_s2 = inlined_call_operand.vmem [shape: f32[1,96], index: 2, kind: input, shape index: {}]   ;;  %s952_s3 = inlined_call_operand.vmem [shape: f32[512,96], index: 3, kind: output, shape index: {}]  }
   0x1 LB: > { %s617_s13 = sadd.s32 4294967295, %s760_s12   ;;  %p621_p0 = scmp.ge.s32.totalorder %s760_s12, 1  ;;  %s760_s12 = sphi %s782_s12, %s13_s12  }
   0x2   : > { %p138_p1 = scmp.lt.s32.totalorder %s760_s12, 3 }
   0x4   : > { %p139_p2 = pnand %p621_p0, %p138_p1 }
   0x5   : > { %s622_s16 = sshll.u32 (!%p139_p2), %s617_s13, 5 }
   0x6   : > { %142 = sbr.rel (%p139_p2) target bundleno = 250 (0xfa), region = 32  ;;  %p163_p3 = scmp.lt.s32.totalorder (!%p139_p2), %s622_s16, 63 }
   0xb   : > { %v735_v0 = vld [vmem:[%s950_s1 + $0x10] sm:$0xff]   ;;  %v736_v1 = vld [vmem:[%s950_s1 + $0x8] sm:$0xff]   ;;  %s954_s16 = smov (!%p163_p3, %s622_s16), 63  ;;  %v737_v2 = vld [vmem:[%s950_s1] sm:$0xff]   ;;  %vm318_vm0 = vcmask 392192   ;;  %vm528_vm1 = vcmask 785408  }
   0xc   : > { %683 = vmatprep.subr.bf16.mxu0 %v735_v0  ;;  %721 = vmatprep.subr.bf16.mxu1 %v735_v0  ;;  %s623_s21 = sshll.u32 %s954_s16, 2  ;;  %s625_s25 = sshll.u32 %s954_s16, 3  ;;  %v843_v19 = vld [vmem:[%s951_s2] ss:$0 sm:$0xff] }
   0xd   : > { %684 = vmatpush3.bf16.msra.mxu0 %v735_v0  ;;  %724 = vmatpush3.bf16.msra.mxu1 %v735_v0  ;;  %s805_s24 = scalar_lea.vmem %s949_s0, %s623_s21  ;;  %s848_s30 = scalar_lea.vmem %s952_s3, %s625_s25 }
   0xe   : > { %685 = vmatprep.subr.bf16.mxu0 %v736_v1  ;;  %722 = vmatprep.subr.bf16.mxu1 %v736_v1  ;;  %v738_v3 = vld [vmem:[%s805_s24] sm:$0xff]   ;;  %v740_v5 = vld [vmem:[%s805_s24 + $0x8] sm:$0xff]   ;;  %v742_v7 = vld [vmem:[%s805_s24 + $0x10] sm:$0xff]  }
   0xf   : > { %v739_v4 = vld [vmem:[%s805_s24 + $0x40] sm:$0xff]   ;;  %689 = vmatprep.mubr.msk.bf16.mxu0 %vm318_vm0, %v738_v3  ;;  %v741_v6 = vld [vmem:[%s805_s24 + $0x48] sm:$0xff]   ;;  %v743_v8 = vld [vmem:[%s805_s24 + $0x50] sm:$0xff]  }
  0x10   : > { %705 = vmatprep.mubr.msk.bf16.mxu1 %vm318_vm0, %v739_v4  ;;  %v744_v9 = vld [vmem:[%s805_s24 + $0x18] sm:$0xff]   ;;  %v746_v11 = vld [vmem:[%s805_s24 + $0x20] sm:$0xff]   ;;  %v748_v13 = vld [vmem:[%s805_s24 + $0x28] sm:$0xff]  }
  0x11   : > { %686 = vmatpush3.bf16.msra.mxu0 %v736_v1  ;;  %725 = vmatpush3.bf16.msra.mxu1 %v736_v1  ;;  %v745_v10 = vld [vmem:[%s805_s24 + $0x58] sm:$0xff]   ;;  %v747_v12 = vld [vmem:[%s805_s24 + $0x60] sm:$0xff]   ;;  %v749_v14 = vld [vmem:[%s805_s24 + $0x68] sm:$0xff]  }
  0x12   : > { %687 = vmatprep.subr.bf16.mxu0 %v737_v2  ;;  %723 = vmatprep.subr.bf16.mxu1 %v737_v2  ;;  %v750_v15 = vld [vmem:[%s805_s24 + $0x30] sm:$0xff]   ;;  %v752_v17 = vld [vmem:[%s805_s24 + $0x38] sm:$0xff]  }
  0x13   : > { %v751_v16 = vld [vmem:[%s805_s24 + $0x70] sm:$0xff]   ;;  %v753_v18 = vld [vmem:[%s805_s24 + $0x78] sm:$0xff]  }
  0x15   : > { %688 = vmatpush3.bf16.msra.mxu0 %v737_v2  ;;  %726 = vmatpush3.bf16.msra.mxu1 %v737_v2 }
  0x18   : > { %690 = vmatmul.mubr.msk.bf16.vlgmr.msra.gmra.mxu0 %vm318_vm0, %v740_v5  ;;  %706 = vmatmul.mubr.msk.bf16.vlgmr.msra.gmra.mxu1 %vm318_vm0, %v741_v6 }
  0x19   : > { %693 = vmatprep.mubr.msk.bf16.mxu0 %vm318_vm0, %v742_v7  ;;  %709 = vmatprep.mubr.msk.bf16.mxu1 %vm318_vm0, %v743_v8 }
  0x20   : > { %694 = vmatmul.mubr.msk.bf16.gmra.mxu0 %vm318_vm0, %v744_v9  ;;  %710 = vmatmul.mubr.msk.bf16.gmra.mxu1 %vm318_vm0, %v745_v10 }
  0x21   : > { %697 = vmatprep.mubr.msk.bf16.mxu0 %vm318_vm0, %v746_v11  ;;  %713 = vmatprep.mubr.msk.bf16.mxu1 %vm318_vm0, %v747_v12 }
  0x28   : > { %698 = vmatmul.mubr.msk.bf16.gmra.mxu0 %vm318_vm0, %v748_v13  ;;  %714 = vmatmul.mubr.msk.bf16.gmra.mxu1 %vm318_vm0, %v749_v14 }
  0x29   : > { %701 = vmatprep.mubr.msk.bf16.mxu0 %vm318_vm0, %v750_v15  ;;  %717 = vmatprep.mubr.msk.bf16.mxu1 %vm318_vm0, %v751_v16 }
  0x30   : > { %702 = vmatmul.mubr.msk.bf16.gmra.mxu0 %vm318_vm0, %v752_v17  ;;  %718 = vmatmul.mubr.msk.bf16.gmra.mxu1 %vm318_vm0, %v753_v18 }
  0xd8   : > { %v691_v20 = vpop.f32.mrf.mxu0  ;;  %v707_v21 = vpop.f32.mrf.mxu1 }
  0xd9   : > { %v410_v22 = vadd.f32 %v691_v20, %v843_v19  ;;  %v474_v23 = vadd.f32 %v707_v21, %v843_v19 }
  0xda   : > { %v401_v24 = vpop.f32.mrf.mxu0  ;;  %v465_v25 = vpop.f32.mrf.mxu1 }
  0xdb   : > { %531 = vst.msk [vmem:[%s848_s30 + $0x10] sm:$0xff] %vm528_vm1, %v410_v22  ;;  %547 = vst.msk [vmem:[%s848_s30 + $0x90] sm:$0xff] %vm528_vm1, %v474_v23  ;;  %v402_v26 = vadd.f32 %v843_v19, %v401_v24  ;;  %v466_v27 = vadd.f32 %v843_v19, %v465_v25 }
  0xdc   : > { %v692_v28 = vpop.f32.mrf.mxu0  ;;  %v708_v29 = vpop.f32.mrf.mxu1 }
  0xdd   : > { %529 = vst.msk [vmem:[%s848_s30] sm:$0xff] %vm528_vm1, %v402_v26  ;;  %545 = vst.msk [vmem:[%s848_s30 + $0x80] sm:$0xff] %vm528_vm1, %v466_v27  ;;  %v413_v30 = vadd.f32 %v692_v28, %v843_v19  ;;  %v477_v31 = vadd.f32 %v708_v29, %v843_v19 }
  0xde   : > { %v404_v32 = vpop.f32.mrf.mxu0  ;;  %v468_v33 = vpop.f32.mrf.mxu1 }
  0xdf   : > { %532 = vst.msk [vmem:[%s848_s30 + $0x18] sm:$0xff] %vm528_vm1, %v413_v30  ;;  %548 = vst.msk [vmem:[%s848_s30 + $0x98] sm:$0xff] %vm528_vm1, %v477_v31  ;;  %v405_v34 = vadd.f32 %v843_v19, %v404_v32  ;;  %v469_v35 = vadd.f32 %v843_v19, %v468_v33 }
  0xe0   : > { %v695_v36 = vpop.f32.mrf.mxu0  ;;  %v711_v37 = vpop.f32.mrf.mxu1 }
  0xe1   : > { %530 = vst.msk [vmem:[%s848_s30 + $0x8] sm:$0xff] %vm528_vm1, %v405_v34  ;;  %546 = vst.msk [vmem:[%s848_s30 + $0x88] sm:$0xff] %vm528_vm1, %v469_v35  ;;  %v426_v38 = vadd.f32 %v695_v36, %v843_v19  ;;  %v490_v39 = vadd.f32 %v711_v37, %v843_v19 }
  0xe2   : > { %v417_v40 = vpop.f32.mrf.mxu0  ;;  %v481_v41 = vpop.f32.mrf.mxu1 }
  0xe3   : > { %535 = vst.msk [vmem:[%s848_s30 + $0x30] sm:$0xff] %vm528_vm1, %v426_v38  ;;  %551 = vst.msk [vmem:[%s848_s30 + $0xb0] sm:$0xff] %vm528_vm1, %v490_v39  ;;  %v418_v42 = vadd.f32 %v843_v19, %v417_v40  ;;  %v482_v43 = vadd.f32 %v843_v19, %v481_v41 }
  0xe4   : > { %v696_v44 = vpop.f32.mrf.mxu0  ;;  %v712_v45 = vpop.f32.mrf.mxu1 }
  0xe5   : > { %533 = vst.msk [vmem:[%s848_s30 + $0x20] sm:$0xff] %vm528_vm1, %v418_v42  ;;  %549 = vst.msk [vmem:[%s848_s30 + $0xa0] sm:$0xff] %vm528_vm1, %v482_v43  ;;  %v429_v46 = vadd.f32 %v696_v44, %v843_v19  ;;  %v493_v47 = vadd.f32 %v712_v45, %v843_v19 }
  0xe6   : > { %v420_v48 = vpop.f32.mrf.mxu0  ;;  %v484_v49 = vpop.f32.mrf.mxu1 }
  0xe7   : > { %536 = vst.msk [vmem:[%s848_s30 + $0x38] sm:$0xff] %vm528_vm1, %v429_v46  ;;  %552 = vst.msk [vmem:[%s848_s30 + $0xb8] sm:$0xff] %vm528_vm1, %v493_v47  ;;  %v421_v50 = vadd.f32 %v843_v19, %v420_v48  ;;  %v485_v51 = vadd.f32 %v843_v19, %v484_v49 }
  0xe8   : > { %v699_v52 = vpop.f32.mrf.mxu0  ;;  %v715_v53 = vpop.f32.mrf.mxu1 }
  0xe9   : > { %534 = vst.msk [vmem:[%s848_s30 + $0x28] sm:$0xff] %vm528_vm1, %v421_v50  ;;  %550 = vst.msk [vmem:[%s848_s30 + $0xa8] sm:$0xff] %vm528_vm1, %v485_v51  ;;  %v442_v54 = vadd.f32 %v699_v52, %v843_v19  ;;  %v506_v55 = vadd.f32 %v715_v53, %v843_v19 }
  0xea   : > { %v433_v56 = vpop.f32.mrf.mxu0  ;;  %v497_v57 = vpop.f32.mrf.mxu1 }
  0xeb   : > { %539 = vst.msk [vmem:[%s848_s30 + $0x50] sm:$0xff] %vm528_vm1, %v442_v54  ;;  %555 = vst.msk [vmem:[%s848_s30 + $0xd0] sm:$0xff] %vm528_vm1, %v506_v55  ;;  %v434_v58 = vadd.f32 %v843_v19, %v433_v56  ;;  %v498_v59 = vadd.f32 %v843_v19, %v497_v57 }
  0xec   : > { %v700_v60 = vpop.f32.mrf.mxu0  ;;  %v716_v61 = vpop.f32.mrf.mxu1 }
  0xed   : > { %537 = vst.msk [vmem:[%s848_s30 + $0x40] sm:$0xff] %vm528_vm1, %v434_v58  ;;  %553 = vst.msk [vmem:[%s848_s30 + $0xc0] sm:$0xff] %vm528_vm1, %v498_v59  ;;  %v445_v62 = vadd.f32 %v700_v60, %v843_v19  ;;  %v509_v63 = vadd.f32 %v716_v61, %v843_v19 }
  0xee   : > { %v436_v0 = vpop.f32.mrf.mxu0  ;;  %v500_v1 = vpop.f32.mrf.mxu1 }
  0xef   : > { %540 = vst.msk [vmem:[%s848_s30 + $0x58] sm:$0xff] %vm528_vm1, %v445_v62  ;;  %556 = vst.msk [vmem:[%s848_s30 + $0xd8] sm:$0xff] %vm528_vm1, %v509_v63  ;;  %v437_v2 = vadd.f32 %v843_v19, %v436_v0  ;;  %v501_v3 = vadd.f32 %v843_v19, %v500_v1 }
  0xf0   : > { %v703_v4 = vpop.f32.mrf.mxu0  ;;  %v719_v5 = vpop.f32.mrf.mxu1 }
  0xf1   : > { %538 = vst.msk [vmem:[%s848_s30 + $0x48] sm:$0xff] %vm528_vm1, %v437_v2  ;;  %554 = vst.msk [vmem:[%s848_s30 + $0xc8] sm:$0xff] %vm528_vm1, %v501_v3  ;;  %v458_v6 = vadd.f32 %v703_v4, %v843_v19  ;;  %v522_v7 = vadd.f32 %v719_v5, %v843_v19 }
  0xf2   : > { %v449_v8 = vpop.f32.mrf.mxu0  ;;  %v513_v9 = vpop.f32.mrf.mxu1 }
  0xf3   : > { %543 = vst.msk [vmem:[%s848_s30 + $0x70] sm:$0xff] %vm528_vm1, %v458_v6  ;;  %559 = vst.msk [vmem:[%s848_s30 + $0xf0] sm:$0xff] %vm528_vm1, %v522_v7  ;;  %v450_v10 = vadd.f32 %v843_v19, %v449_v8  ;;  %v514_v11 = vadd.f32 %v843_v19, %v513_v9 }
  0xf4   : > { %v704_v12 = vpop.f32.mrf.mxu0  ;;  %v720_v13 = vpop.f32.mrf.mxu1 }
  0xf5   : > { %541 = vst.msk [vmem:[%s848_s30 + $0x60] sm:$0xff] %vm528_vm1, %v450_v10  ;;  %557 = vst.msk [vmem:[%s848_s30 + $0xe0] sm:$0xff] %vm528_vm1, %v514_v11  ;;  %v461_v14 = vadd.f32 %v704_v12, %v843_v19  ;;  %v525_v15 = vadd.f32 %v720_v13, %v843_v19 }
  0xf6   : > { %v452_v16 = vpop.f32.mrf.mxu0  ;;  %v516_v17 = vpop.f32.mrf.mxu1 }
  0xf7   : > { %544 = vst.msk [vmem:[%s848_s30 + $0x78] sm:$0xff] %vm528_vm1, %v461_v14  ;;  %560 = vst.msk [vmem:[%s848_s30 + $0xf8] sm:$0xff] %vm528_vm1, %v525_v15  ;;  %v453_v18 = vadd.f32 %v843_v19, %v452_v16  ;;  %v517_v20 = vadd.f32 %v843_v19, %v516_v17 }
  0xf9   : > { %542 = vst.msk [vmem:[%s848_s30 + $0x68] sm:$0xff] %vm528_vm1, %v453_v18  ;;  %558 = vst.msk [vmem:[%s848_s30 + $0xe8] sm:$0xff] %vm528_vm1, %v517_v20 }
  0xfa PF: > { %s13_s12 = sadd.s32 1, %s760_s12  }
  0xfb   : > { %p10_p4 = scmp.ge.s32.totalorder %s13_s12, 4  }
  0xfd   :  { %12 = sbr.rel (!%p10_p4) target bundleno = 1 (0x1), region = 62 }

</bundles_post_ra>
